<compile_context>
chip_gen: v6e
topology: v6e:2x2x1
jax: 0.10.0
libtpu: 0.0.40
codegen_flags: <defaults>
</compile_context>

<pallas_src>
import functools

import jax
import jax.numpy as jnp
from jax.experimental import pallas as pl
from jax.experimental.pallas import tpu as pltpu


def _transition_kernel(x_ref, scale_ref, shift_ref, w_ref, o_ref, *, halve_k):
    # x_ref:     (1, TH, Wo, 2*Cin)  NHWC tile, W-pixel pairs folded into lanes
    # scale_ref: (1, 2*Cin) f32      folded BN scale (tiled twice)
    # shift_ref: (1, 2*Cin) f32      folded BN shift (tiled twice)
    # w_ref:     (K, Cout)           K = Cin (halve_k) or 2*Cin; 0.25 folded in
    # o_ref:     (THo*Wo, Cout)      lane-dense 2-D output slab
    _, TH, Wo, C2 = x_ref.shape
    THo = TH // 2

    # BatchNorm (folded affine) + ReLU in f32 on the VPU.
    x = x_ref[0].astype(jnp.float32)                            # (TH, Wo, 2Cin)
    y = jnp.maximum(x * scale_ref[0] + shift_ref[0], 0.0)

    # Vertical half of the 2x2 average pool: sum adjacent row pairs.
    # Only the leading dim is split, so the (sublane=Wo, lane=2Cin) layout is
    # untouched and the reshape is free.
    yv = y.reshape(THo, 2, Wo, C2)
    p = yv[:, 0] + yv[:, 1]                                     # (THo, Wo, 2Cin)

    if halve_k:
        # Cin % 128 == 0: horizontal pair-sum as a lane-aligned VPU add, so the
        # MXU contracts over Cin only (half the MACs / weight VMEM).
        cin = C2 // 2
        p = p[..., :cin] + p[..., cin:]                         # (THo, Wo, Cin)

    # Remaining (or full) horizontal pool + 1x1 conv fused into ONE MXU matmul.
    # NOTE: this reshape is layout-free only when Wo % 8 == 0; otherwise it may
    # cost an in-VMEM relayout (perf only, never correctness).
    lhs = p.reshape(THo * Wo, p.shape[-1]).astype(w_ref.dtype)
    z = jnp.dot(lhs, w_ref[...], preferred_element_type=jnp.float32)
    o_ref[...] = z.astype(o_ref.dtype)


def _pad_up(x, m):
    return ((x + m - 1) // m) * m


def _tile_vmem_bytes(th, wo, c2, k, cout, in_item, out_item, w_item):
    """Conservative padded-working-set estimate (double-buffered in & out)."""
    in_t = th * _pad_up(wo, 8) * _pad_up(c2, 128) * in_item
    out_t = _pad_up((th // 2) * wo, 8) * _pad_up(cout, 128) * out_item
    w_b = _pad_up(k, 8) * _pad_up(cout, 128) * w_item
    aff = 2 * 8 * _pad_up(c2, 128) * 4
    return 2 * in_t + 2 * out_t + w_b + aff


def _pick_row_tile(H, wo, c2, k, cout, in_item, out_item, w_item,
                   budget_bytes=8 << 20, min_row_tiles=2):
    """Largest even divisor TH of H whose working set fits the budget, while
    keeping >= min_row_tiles grid steps per image (v7x megacore / pipelining)."""
    divs = [th for th in range(2, H + 1, 2) if H % th == 0]
    fits = [th for th in divs
            if _tile_vmem_bytes(th, wo, c2, k, cout,
                                in_item, out_item, w_item) <= budget_bytes]
    if not fits:
        # TODO(synk): add W tiling for layers too wide for even a 2-row band.
        return divs[0]
    pref = [th for th in fits if H // th >= min_row_tiles]
    return max(pref) if pref else max(fits)


def transition_forward_nhwc(x_nhwc, scale, shift, w_cin_cout):
    """Production entry point: NHWC in, NHWC out, no layout transposes.

    x_nhwc:      (N, H, W, Cin)  f32 or bf16 (bf16 halves HBM traffic)
    scale/shift: (Cin,) f32      folded BN affine (gamma/sqrt(var+eps), ...)
    w_cin_cout:  (Cin, Cout)     1x1-conv weight
    """
    N, H, W, Cin = x_nhwc.shape
    Cout = w_cin_cout.shape[1]
    assert H % 2 == 0 and W % 2 == 0, "Transition requires even spatial dims"
    Ho, Wo = H // 2, W // 2
    C2 = 2 * Cin
    io_dtype = x_nhwc.dtype

    # Free (contiguous) reshape: fold adjacent W-pixel pairs into lanes.
    x2 = x_nhwc.reshape(N, H, Wo, C2)
    scale2 = jnp.concatenate([scale, scale]).reshape(1, C2).astype(jnp.float32)
    shift2 = jnp.concatenate([shift, shift]).reshape(1, C2).astype(jnp.float32)

    halve_k = (Cin % 128 == 0)
    if halve_k:
        w2 = (0.25 * w_cin_cout).astype(io_dtype)                  # (Cin, Cout)
    else:
        # Stack the weight for both W pixels; 1/4 pool factor folded in.
        w2 = (0.25 * jnp.concatenate([w_cin_cout, w_cin_cout], axis=0)
              ).astype(io_dtype)                                   # (2Cin, Cout)
    K = w2.shape[0]

    itm = jnp.dtype(io_dtype).itemsize
    TH = _pick_row_tile(H, Wo, C2, K, Cout, itm, itm, itm)
    THo = TH // 2
    n_row_tiles = H // TH

    working_set = _tile_vmem_bytes(TH, Wo, C2, K, Cout, itm, itm, itm)
    vmem_limit = int(min(32 << 20, max(8 << 20, 2 * working_set)))

    cost = pl.CostEstimate(
        flops=int(2 * N * Ho * Wo * K * Cout + 5 * N * H * Wo * C2),
        transcendentals=0,
        bytes_accessed=int(x2.size * itm + w2.size * itm
                           + scale2.size * 4 + shift2.size * 4
                           + N * Ho * Wo * Cout * itm))

    out2d = pl.pallas_call(
        functools.partial(_transition_kernel, halve_k=halve_k),
        out_shape=jax.ShapeDtypeStruct((N * Ho * Wo, Cout), io_dtype),
        grid_spec=pltpu.PrefetchScalarGridSpec(
            num_scalar_prefetch=0,
            grid=(N, n_row_tiles),
            in_specs=[
                pl.BlockSpec((1, TH, Wo, C2), lambda n, h: (n, h, 0, 0)),
                pl.BlockSpec((1, C2), lambda n, h: (0, 0)),
                pl.BlockSpec((1, C2), lambda n, h: (0, 0)),
                pl.BlockSpec((K, Cout), lambda n, h: (0, 0)),
            ],
            out_specs=pl.BlockSpec(
                (THo * Wo, Cout),
                lambda n, h: (n * n_row_tiles + h, 0)),
        ),
        compiler_params=pltpu.CompilerParams(
            dimension_semantics=("parallel", "parallel"),
            vmem_limit_bytes=vmem_limit),
        cost_estimate=cost,
    )(x2, scale2, shift2, w2)

    # Contiguous (free) reshape back to NHWC.
    return out2d.reshape(N, Ho, Wo, Cout)


@functools.partial(jax.jit, static_argnames=("eps", "io_dtype"))
def transition_forward(x_nchw, gamma, beta, running_mean, running_var, conv_w,
                       eps=1e-5, io_dtype=None):
    """NCHW wrapper matching the PyTorch module.  conv_w: (Cout, Cin, 1, 1).

    Set io_dtype=jnp.bfloat16 to ship bf16 over HBM (f32 accumulate inside).
    """
    N, Cin, H, W = x_nchw.shape
    Cout = conv_w.shape[0]

    # Plain-JAX glue: fold eval-mode BatchNorm into a per-channel affine.
    scale = gamma / jnp.sqrt(running_var + eps)               # (Cin,)
    shift = beta - running_mean * scale                       # (Cin,)
    w = jnp.transpose(conv_w.reshape(Cout, Cin), (1, 0))      # (Cin, Cout)

    # TODO(synk): in an NHWC model call transition_forward_nhwc directly --
    # each transpose below is a full extra HBM round trip on a memory-bound op.
    x = jnp.transpose(x_nchw, (0, 2, 3, 1))                   # NCHW -> NHWC
    if io_dtype is not None:
        x = x.astype(io_dtype)
    out_nhwc = transition_forward_nhwc(x, scale, shift, w)
    return jnp.transpose(out_nhwc, (0, 3, 1, 2))              # NHWC -> NCHW


def _reference(x_nchw, gamma, beta, running_mean, running_var, conv_w, eps=1e-5):
    """Pure-JAX reference mirroring the PyTorch forward (eval-mode BN)."""
    scale = (gamma / jnp.sqrt(running_var + eps))[None, :, None, None]
    shift = (beta - running_mean * gamma / jnp.sqrt(running_var + eps))[None, :, None, None]
    y = jnp.maximum(x_nchw * scale + shift, 0.0)
    w2 = conv_w.reshape(conv_w.shape[0], conv_w.shape[1])     # (Cout, Cin)
    z = jnp.einsum("nchw,oc->nohw", y, w2)
    N, Co, H, W = z.shape
    return z.reshape(N, Co, H // 2, 2, W // 2, 2).mean(axis=(3, 5))


if __name__ == "__main__":
    def _run_case(N, Cin, Cout, H, W, io_dtype, atol, rtol, seed=0):
        key = jax.random.PRNGKey(seed)
        kx, kg, kb, km, kv, kw = jax.random.split(key, 6)
        x = jax.random.normal(kx, (N, Cin, H, W), jnp.float32)
        gamma = jax.random.normal(kg, (Cin,), jnp.float32) * 0.1 + 1.0
        beta = jax.random.normal(kb, (Cin,), jnp.float32) * 0.1
        rmean = jax.random.normal(km, (Cin,), jnp.float32) * 0.1
        rvar = jax.random.uniform(kv, (Cin,), jnp.float32, minval=0.5, maxval=1.5)
        conv_w = jax.random.normal(kw, (Cout, Cin, 1, 1), jnp.float32) * 0.1

        out = transition_forward(x, gamma, beta, rmean, rvar, conv_w,
                                 io_dtype=io_dtype)
        out = jax.block_until_ready(out)
        ref = _reference(x, gamma, beta, rmean, rvar, conv_w)
        assert out.shape == (N, Cout, H // 2, W // 2), out.shape
        out_f32 = out.astype(jnp.float32)
        err = float(jnp.max(jnp.abs(out_f32 - ref)))
        assert jnp.allclose(out_f32, ref, atol=atol, rtol=rtol), err

    # f32, small channels -> duplicated-weight (K = 2*Cin) path.
    _run_case(2, 8, 4, 16, 16, None, 1e-5, 1e-5)
    # f32, Cin % 128 == 0 -> lane-half-add / halved-K MXU path.
    _run_case(1, 128, 64, 16, 16, None, 1e-3, 1e-3)
    # bf16 I/O production path (half the HBM bytes), looser tolerance.
    _run_case(2, 8, 4, 16, 16, jnp.bfloat16, 5e-2, 5e-2)

    print("KERNEL_OK")
</pallas_src>

<mosaic_0001>
module attributes {stable_mosaic.version = 11 : i64} {
  func.func @_transition_kernel(%arg0: i32, %arg1: i32, %arg2: memref<1x8x8x16xf32, #tpu.memory_space<vmem>>, %arg3: memref<1x16xf32, #tpu.memory_space<vmem>>, %arg4: memref<1x16xf32, #tpu.memory_space<vmem>>, %arg5: memref<16x4xf32, #tpu.memory_space<vmem>>, %arg6: memref<32x4xf32, #tpu.memory_space<vmem>>) attributes {dimension_semantics = [#tpu.dimension_semantics<parallel>, #tpu.dimension_semantics<parallel>], iteration_bounds = array<i64: 2, 2>, scalar_prefetch = 0 : i64, scratch_operands = 0 : i64, tpu.core_type = #tpu.core_type<tc>, window_params = [{transform_indices = @transform_0, window_bounds = array<i64: 1, 8, 8, 16>}, {pipeline_mode = #tpu.pipeline_mode<synchronous>, transform_indices = @transform_1, window_bounds = array<i64: 1, 16>}, {pipeline_mode = #tpu.pipeline_mode<synchronous>, transform_indices = @transform_2, window_bounds = array<i64: 1, 16>}, {pipeline_mode = #tpu.pipeline_mode<synchronous>, transform_indices = @transform_3, window_bounds = array<i64: 16, 4>}, {transform_indices = @transform_4, window_bounds = array<i64: 32, 4>}]} {
    %c0 = arith.constant 0 : index
    %c0_0 = arith.constant 0 : index
    %c0_1 = arith.constant 0 : index
    %c0_2 = arith.constant 0 : index
    %0 = vector.load %arg2[%c0, %c0_0, %c0_1, %c0_2] : memref<1x8x8x16xf32, #tpu.memory_space<vmem>>, vector<1x8x8x16xf32>
    %1 = vector.shape_cast %0 : vector<1x8x8x16xf32> to vector<8x8x16xf32>
    %c0_3 = arith.constant 0 : index
    %c0_4 = arith.constant 0 : index
    %2 = vector.load %arg3[%c0_3, %c0_4] : memref<1x16xf32, #tpu.memory_space<vmem>>, vector<1x16xf32>
    %3 = vector.shape_cast %2 : vector<1x16xf32> to vector<16xf32>
    %4 = vector.shape_cast %3 : vector<16xf32> to vector<1x1x16xf32>
    %5 = vector.broadcast %4 : vector<1x1x16xf32> to vector<8x8x16xf32>
    %6 = arith.mulf %1, %5 : vector<8x8x16xf32>
    %c0_5 = arith.constant 0 : index
    %c0_6 = arith.constant 0 : index
    %7 = vector.load %arg4[%c0_5, %c0_6] : memref<1x16xf32, #tpu.memory_space<vmem>>, vector<1x16xf32>
    %8 = vector.shape_cast %7 : vector<1x16xf32> to vector<16xf32>
    %9 = vector.shape_cast %8 : vector<16xf32> to vector<1x1x16xf32>
    %10 = vector.broadcast %9 : vector<1x1x16xf32> to vector<8x8x16xf32>
    %11 = arith.addf %6, %10 : vector<8x8x16xf32>
    %cst = arith.constant 0.000000e+00 : f32
    %12 = vector.broadcast %cst : f32 to vector<8x8x16xf32>
    %13 = arith.maximumf %11, %12 : vector<8x8x16xf32>
    %14 = vector.shape_cast %13 : vector<8x8x16xf32> to vector<4x2x8x16xf32>
    %15 = vector.extract_strided_slice %14 {offsets = [0, 0, 0, 0], sizes = [4, 1, 8, 16], strides = [1, 1, 1, 1]} : vector<4x2x8x16xf32> to vector<4x1x8x16xf32>
    %16 = vector.shape_cast %15 : vector<4x1x8x16xf32> to vector<4x8x16xf32>
    %17 = vector.extract_strided_slice %14 {offsets = [0, 1, 0, 0], sizes = [4, 1, 8, 16], strides = [1, 1, 1, 1]} : vector<4x2x8x16xf32> to vector<4x1x8x16xf32>
    %18 = vector.shape_cast %17 : vector<4x1x8x16xf32> to vector<4x8x16xf32>
    %19 = arith.addf %16, %18 : vector<4x8x16xf32>
    %20 = vector.shape_cast %19 : vector<4x8x16xf32> to vector<32x16xf32>
    %c0_7 = arith.constant 0 : index
    %c0_8 = arith.constant 0 : index
    %21 = vector.load %arg5[%c0_7, %c0_8] : memref<16x4xf32, #tpu.memory_space<vmem>>, vector<16x4xf32>
    %cst_9 = arith.constant dense<0.000000e+00> : vector<32x4xf32>
    %22 = tpu.matmul %20, %21, %cst_9 {dimension_numbers = #tpu.dot_dimension_numbers<[1], [0], [0], [1], [0, 0, 1, 1], [], []>} : vector<32x16xf32>, vector<16x4xf32>, vector<32x4xf32> -> vector<32x4xf32>
    %c0_10 = arith.constant 0 : index
    %c0_11 = arith.constant 0 : index
    %23 = vector.load %arg6[%c0_10, %c0_11] : memref<32x4xf32, #tpu.memory_space<vmem>>, vector<32x4xf32>
    tpu.vector_store %arg6[%c0_10, %c0_11], %22 {strides = array<i32>} : memref<32x4xf32, #tpu.memory_space<vmem>>, vector<32x4xf32>,
    return
  }
  func.func @transform_0(%arg0: i32, %arg1: i32) -> (i32, i32, i32, i32) {
    %c0_i32 = arith.constant 0 : i32
    %c0_i32_0 = arith.constant 0 : i32
    %c0_i32_1 = arith.constant 0 : i32
    return %arg0, %arg1, %c0_i32, %c0_i32_0 : i32, i32, i32, i32
  }
  func.func @transform_1(%arg0: i32, %arg1: i32) -> (i32, i32) {
    %c0_i32 = arith.constant 0 : i32
    %c0_i32_0 = arith.constant 0 : i32
    %c0_i32_1 = arith.constant 0 : i32
    return %c0_i32, %c0_i32_0 : i32, i32
  }
  func.func @transform_2(%arg0: i32, %arg1: i32) -> (i32, i32) {
    %c0_i32 = arith.constant 0 : i32
    %c0_i32_0 = arith.constant 0 : i32
    %c0_i32_1 = arith.constant 0 : i32
    return %c0_i32, %c0_i32_0 : i32, i32
  }
  func.func @transform_3(%arg0: i32, %arg1: i32) -> (i32, i32) {
    %c0_i32 = arith.constant 0 : i32
    %c0_i32_0 = arith.constant 0 : i32
    %c0_i32_1 = arith.constant 0 : i32
    return %c0_i32, %c0_i32_0 : i32, i32
  }
  func.func @transform_4(%arg0: i32, %arg1: i32) -> (i32, i32) {
    %c2_i32 = arith.constant 2 : i32
    %0 = arith.muli %arg0, %c2_i32 : i32
    %1 = arith.addi %0, %arg1 : i32
    %c0_i32 = arith.constant 0 : i32
    %c0_i32_0 = arith.constant 0 : i32
    return %1, %c0_i32 : i32, i32
  }
}

</mosaic_0001>

<bundles_post_ra>
// kernel: transition_forward.1
= control target key start
LH: loop header
LB: loop body
LE: loop exit
PB: predicated region body
PF: predicated region fallthrough
CT: control target
= control target key end

     0   :  { %s618_s15 = smov 0   ;;  %s620_s16 = smov 0   ;;  %s694_s0 = inlined_call_operand.vmem [shape: f32[2,16,8,16], index: 0, kind: input, shape index: {}]   ;;  %s695_s1 = inlined_call_operand.vmem [shape: f32[1,16], index: 1, kind: input, shape index: {}]   ;;  %s696_s2 = inlined_call_operand.vmem [shape: f32[1,16], index: 2, kind: input, shape index: {}]   ;;  %s697_s3 = inlined_call_operand.vmem [shape: f32[16,4], index: 3, kind: input, shape index: {}]   ;;  %s698_s4 = inlined_call_operand.vmem [shape: f32[128,4], index: 4, kind: output, shape index: {}]  }
   0x1   :  { %s622_s17 = smov 0   ;;  %s624_s18 = smov 0  }
   0x2   :  { %s626_s19 = smov 0  }
   0x3 LB: > { %s23_s20 = sadd.s32 1, %s583_s17  ;;  %s26_s21 = sadd.s32 1, %s587_s18  ;;  %s591_s19 = sphi %s626_s19, %s14_s19   ;;  %s587_s18 = sphi %s624_s18, %s702_s18   ;;  %s583_s17 = sphi %s622_s17, %s701_s17   ;;  %s579_s16 = sphi %s620_s16, %s700_s16   ;;  %s575_s15 = sphi %s618_s15, %s699_s15  }
   0x4   : > { %p24_p0 = scmp.ge.s32.totalorder %s23_s20, 2  ;;  %p478_p1 = scmp.ge.s32.totalorder %s591_s19, 1 }
   0x5   : > { %p185_p2 = scmp.lt.s32.totalorder %s591_s19, 5 }
   0x6   : > { %s704_s20 = smov (%p24_p0, %s23_s20), 0  ;;  %s706_s21 = smov (!%p24_p0, %s26_s21), %s587_s18 }
   0x7   : > { %p186_p3 = pnand %p478_p1, %p185_p2  ;;  %p28_p4 = scmp.ge.s32.totalorder %s706_s21, 2 }
   0x8   : > { %s479_s26 = sshll.u32 (!%p186_p3), %s575_s15, 3  ;;  %p218_p5 = scmp.lt.s32.totalorder (!%p186_p3), %s579_s16, 1 }
   0x9   : > { %s708_s21 = smov (%p28_p4, %s706_s21), 0  ;;  %189 = sbr.rel (%p186_p3) target bundleno = 228 (0xe4), region = 36 }
   0xa   : > { %p220_p6 = scmp.lt.s32.totalorder (!%p186_p3), %s479_s26, 15  ;;  %s482_s12 = sshll.u32 (!%p186_p3), %s579_s16, 1 }
   0xb   : > { %s228_s13 = sadd.s32 (!%p186_p3), %s575_s15, %s482_s12 }
   0xc   : > { %s483_s14 = sshll.u32 (!%p186_p3), %s228_s13, 2 }
   0xd   : > { %p230_p7 = scmp.lt.s32.totalorder (!%p186_p3), %s483_s14, 15 }
   0xe   : > { %v288_v0 = vld [vmem:[%s697_s3 + $0x8] sm:$0xff]  ;;  %v287_v1 = vld [vmem:[%s697_s3] sm:$0xff]  ;;  %s219_s27 = scalar_select %p218_p5, %s579_s16, 1  ;;  %vm289_vm0 = vcmask 130048   ;;  %vm387_vm1 = vcmask 31744  }
   0xf   : > { %499 = vmatprep.subr.mxu0 %v288_v0  ;;  %509 = vmatprep.subr.mxu1 %v288_v0  ;;  %s710_s26 = smov (!%p220_p6, %s479_s26), 15  ;;  %v485_v2 = vld [vmem:[%s695_s1] ss:$0 sm:$0xff]  ;;  %s712_s14 = smov (!%p230_p7, %s483_s14), 15 }
  0x10   : > { %500 = vmatpush3.msra.mxu0 %v288_v0  ;;  %511 = vmatpush3.msra.mxu1 %v288_v0  ;;  %s480_s28 = sshll.u32 %s219_s27, 4  ;;  %v486_v3 = vld [vmem:[%s696_s2] ss:$0 sm:$0xff]  ;;  %s484_s22 = sshll.u32 %s712_s14, 3 }
  0x11   : > { %501 = vmatprep.subr.mxu0 %v287_v1  ;;  %510 = vmatprep.subr.mxu1 %v287_v1  ;;  %s223_s29 = sadd.s32 %s480_s28, %s710_s26  ;;  %s233_s25 = scalar_lea.vmem %s698_s4, %s484_s22 }
  0x12   : > { %502 = vmatpush3.msra.mxu0 %v287_v1  ;;  %512 = vmatpush3.msra.mxu1 %v287_v1  ;;  %s481_s30 = sshll.u32 %s223_s29, 3 }
  0x13   : > { %s225_s9 = scalar_lea.vmem %s694_s0, %s481_s30 }
  0x14   : > { %v237_v4 = vld [vmem:[%s225_s9] sm:$0xff]  ;;  %v238_v5 = vld [vmem:[%s225_s9 + $0x8] sm:$0xff]  ;;  %v239_v11 = vld [vmem:[%s225_s9 + $0x10] sm:$0xff] }
  0x15   : > { %v241_v6 = vld [vmem:[%s225_s9 + $0x20] sm:$0xff]  ;;  %v252_v7 = vmul.f32 %v485_v2, %v237_v4  ;;  %v253_v8 = vmul.f32 %v485_v2, %v238_v5  ;;  %v242_v9 = vld [vmem:[%s225_s9 + $0x28] sm:$0xff]  ;;  %v240_v12 = vld [vmem:[%s225_s9 + $0x18] sm:$0xff]  ;;  %v254_v14 = vmul.f32 %v485_v2, %v239_v11 }
  0x16   : > { %v256_v10 = vmul.f32 %v485_v2, %v241_v6  ;;  %v257_v13 = vmul.f32 %v485_v2, %v242_v9  ;;  %v255_v15 = vmul.f32 %v485_v2, %v240_v12  ;;  %v243_v16 = vld [vmem:[%s225_s9 + $0x30] sm:$0xff]  ;;  %v244_v17 = vld [vmem:[%s225_s9 + $0x38] sm:$0xff] }
  0x17   : > { %v267_v18 = vadd.f32 %v486_v3, %v252_v7  ;;  %v268_v19 = vadd.f32 %v486_v3, %v253_v8  ;;  %v258_v21 = vmul.f32 %v485_v2, %v243_v16  ;;  %v269_v23 = vadd.f32 %v486_v3, %v254_v14 }
  0x18   : > { %v271_v20 = vadd.f32 %v486_v3, %v256_v10  ;;  %v272_v22 = vadd.f32 %v486_v3, %v257_v13  ;;  %v270_v24 = vadd.f32 %v486_v3, %v255_v15  ;;  %v259_v25 = vmul.f32 %v485_v2, %v244_v17 }
  0x19   : > { %v275_v26 = vmax.f32 %v267_v18, 0.0  ;;  %v276_v27 = vmax.f32 %v268_v19, 0.0  ;;  %v273_v29 = vadd.f32 %v486_v3, %v258_v21  ;;  %v277_v31 = vmax.f32 %v269_v23, 0.0 }
  0x1a   : > { %v279_v28 = vmax.f32 %v271_v20, 0.0  ;;  %v280_v30 = vmax.f32 %v272_v22, 0.0  ;;  %v278_v32 = vmax.f32 %v270_v24, 0.0  ;;  %v274_v33 = vadd.f32 %v486_v3, %v259_v25 }
  0x1b   : > { %v283_v34 = vadd.f32 %v276_v27, %v275_v26  ;;  %v281_v35 = vmax.f32 %v273_v29, 0.0 }
  0x1c   : > { %v285_v36 = vadd.f32 %v280_v30, %v279_v28  ;;  %v284_v37 = vadd.f32 %v278_v32, %v277_v31  ;;  %v282_v38 = vmax.f32 %v274_v33, 0.0 }
  0x1d   : > { %503 = vmatprep.mubr.msk.f32.mxu0 %vm289_vm0, %v283_v34 }
  0x1e   : > { %506 = vmatprep.mubr.msk.f32.mxu1 %vm289_vm0, %v285_v36  ;;  %504 = vmatmul.mubr.msk.f32.vlgmr.msra.gmra.mxu0 %vm289_vm0, %v284_v37  ;;  %v286_v39 = vadd.f32 %v282_v38, %v281_v35 }
  0x20   : > { %507 = vmatmul.mubr.msk.f32.vlgmr.msra.gmra.mxu1 %vm289_vm0, %v286_v39 }
  0xde   : > { %v505_v40 = vpop.f32.mrf.mxu0 }
  0xdf   : > { %389 = vst.msk [vmem:[%s233_s25 + $0x8] sm:$0xff] %vm387_vm1, %v505_v40 }
  0xe0   : > { %v508_v41 = vpop.f32.mrf.mxu1  ;;  %v368_v42 = vpop.f32.mrf.mxu0 }
  0xe1   : > { %391 = vst.msk [vmem:[%s233_s25 + $0x18] sm:$0xff] %vm387_vm1, %v508_v41  ;;  %388 = vst.msk [vmem:[%s233_s25] sm:$0xff] %vm387_vm1, %v368_v42 }
  0xe2   : > { %v378_v43 = vpop.f32.mrf.mxu1 }
  0xe3   : > { %390 = vst.msk [vmem:[%s233_s25 + $0x10] sm:$0xff] %vm387_vm1, %v378_v43 }
  0xe4 PF: > { %s14_s19 = sadd.s32 1, %s591_s19   ;;  %s699_s15 = smov %s583_s17 }
  0xe5   : > { %p11_p8 = scmp.ge.s32.totalorder %s14_s19, 6   ;;  %s700_s16 = smov %s587_s18 }
  0xe6   : > { %s701_s17 = smov %s704_s20  ;;  %s702_s18 = smov %s708_s21 }
  0xe7   :  { %13 = sbr.rel (!%p11_p8) target bundleno = 3 (0x3), region = 66 }

</bundles_post_ra>
